<compile_context>
chip_gen: v7x
topology: tpu7x:2x2x1
jax: 0.10.0
libtpu: 0.0.40
codegen_flags: <defaults>
</compile_context>

<pallas_src>
import jax
import jax.numpy as jnp
import numpy as np
from jax.experimental import pallas as pl
from jax.experimental.pallas import tpu as pltpu

# ---- small shapes consistent with the module (ViT encoder block) ----
BATCH = 2
IMG = 32
PATCH = 8
CH = 3
EMBED = 128               # embed_size (conv embed_dim == embed_size so shapes agree)
HEADS = 2
HE = HEADS * EMBED        # 256
NP_SIDE = IMG // PATCH
N = NP_SIDE * NP_SIDE     # n_patches = 16 tokens / image
HALF = N // 2             # rows per head block induced by the torch .view (=8)
CPP = CH * PATCH * PATCH  # flattened patch length = 192
EPS = 1e-5                # nn.LayerNorm default


# ---------------- single fused kernel ------------------------------------------
def encoder_kernel(p_ref, wc_ref, bc_ref, g_ref, bln_ref,
                   wqkv_ref, bqkv_ref, wll_ref, bll_ref, out_ref):
    rows = p_ref.shape[0]            # (#batch elems in this grid step) * N
    b_blk = rows // N

    # ---- patch embedding: Conv2d(k=stride=patch) == im2col matmul (bf16 MXU, f32 acc)
    emb = jnp.dot(p_ref[...], wc_ref[...],
                  preferred_element_type=jnp.float32) + bc_ref[...]         # (rows, E) f32

    # ---- LayerNorm over E (f32; var = E[x^2]-E[x]^2, rsqrt goes to the EUP)
    mu = jnp.mean(emb, axis=-1, keepdims=True)
    var = jnp.mean(emb * emb, axis=-1, keepdims=True) - mu * mu
    ln = (emb - mu) * jax.lax.rsqrt(var + EPS) * g_ref[...] + bln_ref[...]

    # ---- fused K|Q|V projection: single (E, 3*2E) matmul
    qkv = jnp.dot(ln.astype(jnp.bfloat16), wqkv_ref[...],
                  preferred_element_type=jnp.float32) + bqkv_ref[...]       # (rows, 3*2E)
    kf = qkv[:, 0 * HE:1 * HE]       # (rows, 2E)
    qf = qkv[:, 1 * HE:2 * HE]
    vf = qkv[:, 2 * HE:3 * HE]

    # torch view (N, 2E) -> (heads, N, E): head-token (h, l) of batch b lives at
    #   row N*b + HALF*h + l//2, lane-half l%2   of kf/qf/vf.
    # Diagonal attention energies d[b, h, l] = <k3[b,h,l], q3[b,h,l]>:
    prod = kf * qf
    d_even = jnp.sum(prod[:, :EMBED], axis=-1, keepdims=True)   # (rows,1): d[b,h,2m]
    d_odd = jnp.sum(prod[:, EMBED:], axis=-1, keepdims=True)    # (rows,1): d[b,h,2m+1]

    # softmax over the head axis (torch softmax(energy, dim=1)); pointwise in (l,l),
    # so only the diagonal is needed.  Static (<=2-iteration) loop over batch block.
    w_even_parts, w_odd_parts = [], []
    for bb in range(b_blk):
        base = bb * N
        for d_half, parts in ((d_even, w_even_parts), (d_odd, w_odd_parts)):
            d0 = d_half[base:base + HALF]            # head 0, (8, 1)
            d1 = d_half[base + HALF:base + N]        # head 1, (8, 1)
            m = jnp.maximum(d0, d1)
            e0 = jnp.exp(d0 - m)
            e1 = jnp.exp(d1 - m)
            inv = pl.reciprocal(e0 + e1, approx=True)
            parts.append(e0 * inv)                   # head-0 weights
            parts.append(e1 * inv)                   # head-1 weights
    w_even = jnp.concatenate(w_even_parts, axis=0)   # (rows, 1) aligned with vf rows
    w_odd = jnp.concatenate(w_odd_parts, axis=0)     # (rows, 1)

    # f_energy in the (rows, 2E) layout, then un-interleave the two lane halves
    # into per-token rows: (rows, 2E) -> (2*rows, E) with row 2N*b + N*h + l = fe[b,h,l].
    fe = jnp.concatenate([vf[:, :EMBED] * w_even, vf[:, EMBED:] * w_odd], axis=-1)
    f2 = fe.reshape(rows * 2, EMBED)

    # head-concat per token (head0 | head1) and a single (2E, E) output projection
    cat_parts = []
    for bb in range(b_blk):
        h0 = f2[bb * 2 * N:bb * 2 * N + N]           # (N, E), row = token l, head 0
        h1 = f2[bb * 2 * N + N:bb * 2 * N + 2 * N]   # (N, E), head 1
        cat_parts.append(jnp.concatenate([h0, h1], axis=-1))
    fe_cat = jnp.concatenate(cat_parts, axis=0)      # (rows, 2E)
    attn = jnp.dot(fe_cat.astype(jnp.bfloat16), wll_ref[...],
                   preferred_element_type=jnp.float32) + bll_ref[...]       # (rows, E)

    out_ref[...] = emb + attn                        # residual; lane-dense f32 store


# ---------------- one-time weight preparation ----------------------------------
def prepare_params(params):
    """Pre-transpose / pre-concat / pre-cast weights once (outside the per-call path)."""
    wqkv = jnp.concatenate([params["k_w"].T, params["q_w"].T, params["v_w"].T], axis=1)
    bqkv = jnp.concatenate([params["k_b"], params["q_b"], params["v_b"]])
    return {
        "wc": params["conv_w"].reshape(EMBED, CPP).T.astype(jnp.bfloat16),  # (CPP, E)
        "bc": params["conv_b"].reshape(1, EMBED).astype(jnp.float32),
        "g": params["ln_g"].reshape(1, EMBED).astype(jnp.float32),
        "bln": params["ln_b"].reshape(1, EMBED).astype(jnp.float32),
        "wqkv": wqkv.astype(jnp.bfloat16),                                  # (E, 3*2E)
        "bqkv": bqkv.reshape(1, 3 * HE).astype(jnp.float32),
        "wll": params["ll_w"].T.astype(jnp.bfloat16),                       # (2E, E)
        "bll": params["ll_b"].reshape(1, EMBED).astype(jnp.float32),
    }


def _num_grid_steps(batch):
    # v7x has 2 TensorCores/chip: keep a 2-wide "parallel" grid so both get work.
    # Single-TC chips (v5e/v6e): fold the whole batch into ONE grid step.
    try:
        kind = jax.devices()[0].device_kind.lower()
    except Exception:
        kind = ""
    if ("v7" in kind or "tpu7" in kind) and batch % 2 == 0:
        return 2
    return 1


# ---------------- wrapper -------------------------------------------------------
def encoder_block(x, prep):
    B, C, H, W = x.shape
    nH, nW = H // PATCH, W // PATCH
    n = nH * nW
    # Patch extraction (Conv2d k=stride=patch im2col) -- pure layout, left to XLA.
    patches = x.reshape(B, C, nH, PATCH, nW, PATCH).transpose(0, 2, 4, 1, 3, 5)
    patches = patches.reshape(B * n, CPP).astype(jnp.bfloat16)

    steps = _num_grid_steps(B)
    rows_blk = (B // steps) * n

    rep = lambda shape: pl.BlockSpec(shape, lambda i: (0, 0))
    flops = 2 * B * n * (CPP * EMBED + EMBED * 3 * HE + HE * EMBED)
    bytes_accessed = (patches.size * 2
                      + (CPP * EMBED + EMBED * 3 * HE + HE * EMBED) * 2
                      + (5 * EMBED + 3 * HE) * 4
                      + B * n * EMBED * 4)

    out_flat = pl.pallas_call(
        encoder_kernel,
        grid=(steps,),
        in_specs=[
            pl.BlockSpec((rows_blk, CPP), lambda i: (i, 0)),
            rep((CPP, EMBED)), rep((1, EMBED)),
            rep((1, EMBED)), rep((1, EMBED)),
            rep((EMBED, 3 * HE)), rep((1, 3 * HE)),
            rep((HE, EMBED)), rep((1, EMBED)),
        ],
        out_specs=pl.BlockSpec((rows_blk, EMBED), lambda i: (i, 0)),
        out_shape=jax.ShapeDtypeStruct((B * n, EMBED), jnp.float32),
        compiler_params=pltpu.CompilerParams(dimension_semantics=("parallel",)),
        cost_estimate=pl.CostEstimate(flops=flops, transcendentals=6 * B * n,
                                      bytes_accessed=bytes_accessed),
    )(patches, prep["wc"], prep["bc"], prep["g"], prep["bln"],
      prep["wqkv"], prep["bqkv"], prep["wll"], prep["bll"])
    return out_flat.reshape(B, n, EMBED)


# ---------------- pure-JAX reference mirroring the torch forward exactly -------
def reference(x, params):
    hp = jax.lax.Precision.HIGHEST
    B, C, H, W = x.shape
    nH, nW = H // PATCH, W // PATCH
    n = nH * nW
    patches = x.reshape(B, C, nH, PATCH, nW, PATCH).transpose(0, 2, 4, 1, 3, 5)
    patches = patches.reshape(B, n, CPP)
    emb = jnp.dot(patches, params["conv_w"].reshape(EMBED, CPP).T, precision=hp) \
        + params["conv_b"]
    mu = emb.mean(-1, keepdims=True)
    var = ((emb - mu) ** 2).mean(-1, keepdims=True)
    ln = (emb - mu) / jnp.sqrt(var + EPS) * params["ln_g"] + params["ln_b"]
    kf = jnp.dot(ln, params["k_w"].T, precision=hp) + params["k_b"]
    qf = jnp.dot(ln, params["q_w"].T, precision=hp) + params["q_b"]
    vf = jnp.dot(ln, params["v_w"].T, precision=hp) + params["v_b"]
    k = kf.reshape(B, HEADS, n, EMBED)
    q = qf.reshape(B, HEADS, n, EMBED)
    v = vf.reshape(B, HEADS, n, EMBED)
    energy = jnp.matmul(k, q.transpose(0, 1, 3, 2), precision=hp)
    energy = jax.nn.softmax(energy, axis=1)            # softmax over head dim (torch dim=1)
    fe = jnp.einsum("bnll,bnle->bnle", energy, v)      # diagonal * value
    fe = fe.transpose(0, 2, 1, 3).reshape(B, n, HEADS * EMBED)
    out = jnp.dot(fe, params["ll_w"].T, precision=hp) + params["ll_b"]
    return emb + out


if __name__ == "__main__":
    key = jax.random.PRNGKey(0)
    keys = jax.random.split(key, 16)
    s = 0.05
    params = {
        "conv_w": s * jax.random.normal(keys[0], (EMBED, CH, PATCH, PATCH), jnp.float32),
        "conv_b": s * jax.random.normal(keys[1], (EMBED,), jnp.float32),
        "ln_g": 1.0 + 0.1 * jax.random.normal(keys[2], (EMBED,), jnp.float32),
        "ln_b": 0.1 * jax.random.normal(keys[3], (EMBED,), jnp.float32),
        "k_w": s * jax.random.normal(keys[4], (HEADS * EMBED, EMBED), jnp.float32),
        "k_b": s * jax.random.normal(keys[5], (HEADS * EMBED,), jnp.float32),
        "q_w": s * jax.random.normal(keys[6], (HEADS * EMBED, EMBED), jnp.float32),
        "q_b": s * jax.random.normal(keys[7], (HEADS * EMBED,), jnp.float32),
        "v_w": s * jax.random.normal(keys[8], (HEADS * EMBED, EMBED), jnp.float32),
        "v_b": s * jax.random.normal(keys[9], (HEADS * EMBED,), jnp.float32),
        "ll_w": s * jax.random.normal(keys[10], (EMBED, HEADS * EMBED), jnp.float32),
        "ll_b": s * jax.random.normal(keys[11], (EMBED,), jnp.float32),
    }
    x = jax.random.normal(keys[12], (BATCH, CH, IMG, IMG), jnp.float32)

    prep = prepare_params(params)          # one-time weight transpose/concat/bf16 cast
    out = encoder_block(x, prep)
    out = jax.block_until_ready(out)

    ref = reference(x, params)
    # bf16 MXU inputs with f32 accumulation -> ~1e-2 worst-case abs error vs f32 ref.
    np.testing.assert_allclose(np.asarray(out), np.asarray(ref), rtol=2e-2, atol=2e-2)
    print("KERNEL_OK")
</pallas_src>

<mosaic_0001>
module attributes {stable_mosaic.version = 11 : i64} {
  func.func @encoder_kernel(%arg0: i32, %arg1: memref<32x192xbf16, #tpu.memory_space<vmem>>, %arg2: memref<192x128xbf16, #tpu.memory_space<vmem>>, %arg3: memref<1x128xf32, #tpu.memory_space<vmem>>, %arg4: memref<1x128xf32, #tpu.memory_space<vmem>>, %arg5: memref<1x128xf32, #tpu.memory_space<vmem>>, %arg6: memref<128x768xbf16, #tpu.memory_space<vmem>>, %arg7: memref<1x768xf32, #tpu.memory_space<vmem>>, %arg8: memref<256x128xbf16, #tpu.memory_space<vmem>>, %arg9: memref<1x128xf32, #tpu.memory_space<vmem>>, %arg10: memref<32x128xf32, #tpu.memory_space<vmem>>) attributes {dimension_semantics = [#tpu.dimension_semantics<parallel>], iteration_bounds = array<i64: 1>, scalar_prefetch = 0 : i64, scratch_operands = 0 : i64, tpu.core_type = #tpu.core_type<tc>, window_params = [{transform_indices = @transform_0, window_bounds = array<i64: 32, 192>}, {pipeline_mode = #tpu.pipeline_mode<synchronous>, transform_indices = @transform_1, window_bounds = array<i64: 192, 128>}, {pipeline_mode = #tpu.pipeline_mode<synchronous>, transform_indices = @transform_2, window_bounds = array<i64: 1, 128>}, {pipeline_mode = #tpu.pipeline_mode<synchronous>, transform_indices = @transform_3, window_bounds = array<i64: 1, 128>}, {pipeline_mode = #tpu.pipeline_mode<synchronous>, transform_indices = @transform_4, window_bounds = array<i64: 1, 128>}, {pipeline_mode = #tpu.pipeline_mode<synchronous>, transform_indices = @transform_5, window_bounds = array<i64: 128, 768>}, {pipeline_mode = #tpu.pipeline_mode<synchronous>, transform_indices = @transform_6, window_bounds = array<i64: 1, 768>}, {pipeline_mode = #tpu.pipeline_mode<synchronous>, transform_indices = @transform_7, window_bounds = array<i64: 256, 128>}, {pipeline_mode = #tpu.pipeline_mode<synchronous>, transform_indices = @transform_8, window_bounds = array<i64: 1, 128>}, {transform_indices = @transform_9, window_bounds = array<i64: 32, 128>}]} {
    %c0 = arith.constant 0 : index
    %c0_0 = arith.constant 0 : index
    %0 = vector.load %arg1[%c0, %c0_0] : memref<32x192xbf16, #tpu.memory_space<vmem>>, vector<32x192xbf16>
    %c0_1 = arith.constant 0 : index
    %c0_2 = arith.constant 0 : index
    %1 = vector.load %arg2[%c0_1, %c0_2] : memref<192x128xbf16, #tpu.memory_space<vmem>>, vector<192x128xbf16>
    %cst = arith.constant dense<0.000000e+00> : vector<32x128xf32>
    %2 = tpu.matmul %0, %1, %cst {dimension_numbers = #tpu.dot_dimension_numbers<[1], [0], [0], [1], [0, 0, 1, 1], [], []>} : vector<32x192xbf16>, vector<192x128xbf16>, vector<32x128xf32> -> vector<32x128xf32>
    %c0_3 = arith.constant 0 : index
    %c0_4 = arith.constant 0 : index
    %3 = vector.load %arg3[%c0_3, %c0_4] : memref<1x128xf32, #tpu.memory_space<vmem>>, vector<1x128xf32>
    %4 = vector.broadcast %3 : vector<1x128xf32> to vector<32x128xf32>
    %5 = arith.addf %2, %4 : vector<32x128xf32>
    %cst_5 = arith.constant dense<0.000000e+00> : vector<32xf32>
    %6 = vector.multi_reduction <add>, %5, %cst_5 [1] : vector<32x128xf32> to vector<32xf32>
    %7 = vector.shape_cast %6 : vector<32xf32> to vector<32x1xf32>
    %cst_6 = arith.constant 1.280000e+02 : f32
    %8 = vector.broadcast %cst_6 : f32 to vector<32x1xf32>
    %9 = arith.divf %7, %8 : vector<32x1xf32>
    %10 = arith.mulf %5, %5 : vector<32x128xf32>
    %cst_7 = arith.constant dense<0.000000e+00> : vector<32xf32>
    %11 = vector.multi_reduction <add>, %10, %cst_7 [1] : vector<32x128xf32> to vector<32xf32>
    %12 = vector.shape_cast %11 : vector<32xf32> to vector<32x1xf32>
    %cst_8 = arith.constant 1.280000e+02 : f32
    %13 = vector.broadcast %cst_8 : f32 to vector<32x1xf32>
    %14 = arith.divf %12, %13 : vector<32x1xf32>
    %15 = arith.mulf %9, %9 : vector<32x1xf32>
    %16 = arith.subf %14, %15 : vector<32x1xf32>
    %17 = vector.broadcast %9 : vector<32x1xf32> to vector<32x128xf32>
    %18 = arith.subf %5, %17 : vector<32x128xf32>
    %cst_9 = arith.constant 9.99999974E-6 : f32
    %19 = vector.broadcast %cst_9 : f32 to vector<32x1xf32>
    %20 = arith.addf %16, %19 : vector<32x1xf32>
    %21 = math.rsqrt %20 : vector<32x1xf32>
    %22 = vector.broadcast %21 : vector<32x1xf32> to vector<32x128xf32>
    %23 = arith.mulf %18, %22 : vector<32x128xf32>
    %c0_10 = arith.constant 0 : index
    %c0_11 = arith.constant 0 : index
    %24 = vector.load %arg4[%c0_10, %c0_11] : memref<1x128xf32, #tpu.memory_space<vmem>>, vector<1x128xf32>
    %25 = vector.broadcast %24 : vector<1x128xf32> to vector<32x128xf32>
    %26 = arith.mulf %23, %25 : vector<32x128xf32>
    %c0_12 = arith.constant 0 : index
    %c0_13 = arith.constant 0 : index
    %27 = vector.load %arg5[%c0_12, %c0_13] : memref<1x128xf32, #tpu.memory_space<vmem>>, vector<1x128xf32>
    %28 = vector.broadcast %27 : vector<1x128xf32> to vector<32x128xf32>
    %29 = arith.addf %26, %28 : vector<32x128xf32>
    %30 = arith.truncf %29 : vector<32x128xf32> to vector<32x128xbf16>
    %c0_14 = arith.constant 0 : index
    %c0_15 = arith.constant 0 : index
    %31 = vector.load %arg6[%c0_14, %c0_15] : memref<128x768xbf16, #tpu.memory_space<vmem>>, vector<128x768xbf16>
    %cst_16 = arith.constant dense<0.000000e+00> : vector<32x768xf32>
    %32 = tpu.matmul %30, %31, %cst_16 {dimension_numbers = #tpu.dot_dimension_numbers<[1], [0], [0], [1], [0, 0, 1, 1], [], []>} : vector<32x128xbf16>, vector<128x768xbf16>, vector<32x768xf32> -> vector<32x768xf32>
    %c0_17 = arith.constant 0 : index
    %c0_18 = arith.constant 0 : index
    %33 = vector.load %arg7[%c0_17, %c0_18] : memref<1x768xf32, #tpu.memory_space<vmem>>, vector<1x768xf32>
    %34 = vector.broadcast %33 : vector<1x768xf32> to vector<32x768xf32>
    %35 = arith.addf %32, %34 : vector<32x768xf32>
    %36 = vector.extract_strided_slice %35 {offsets = [0, 0], sizes = [32, 256], strides = [1, 1]} : vector<32x768xf32> to vector<32x256xf32>
    %37 = vector.extract_strided_slice %35 {offsets = [0, 256], sizes = [32, 256], strides = [1, 1]} : vector<32x768xf32> to vector<32x256xf32>
    %38 = vector.extract_strided_slice %35 {offsets = [0, 512], sizes = [32, 256], strides = [1, 1]} : vector<32x768xf32> to vector<32x256xf32>
    %39 = arith.mulf %36, %37 : vector<32x256xf32>
    %40 = vector.extract_strided_slice %39 {offsets = [0, 0], sizes = [32, 128], strides = [1, 1]} : vector<32x256xf32> to vector<32x128xf32>
    %cst_19 = arith.constant dense<0.000000e+00> : vector<32xf32>
    %41 = vector.multi_reduction <add>, %40, %cst_19 [1] : vector<32x128xf32> to vector<32xf32>
    %42 = vector.shape_cast %41 : vector<32xf32> to vector<32x1xf32>
    %43 = vector.extract_strided_slice %39 {offsets = [0, 128], sizes = [32, 128], strides = [1, 1]} : vector<32x256xf32> to vector<32x128xf32>
    %cst_20 = arith.constant dense<0.000000e+00> : vector<32xf32>
    %44 = vector.multi_reduction <add>, %43, %cst_20 [1] : vector<32x128xf32> to vector<32xf32>
    %45 = vector.shape_cast %44 : vector<32xf32> to vector<32x1xf32>
    %46 = vector.extract_strided_slice %42 {offsets = [0, 0], sizes = [8, 1], strides = [1, 1]} : vector<32x1xf32> to vector<8x1xf32>
    %47 = vector.extract_strided_slice %42 {offsets = [8, 0], sizes = [8, 1], strides = [1, 1]} : vector<32x1xf32> to vector<8x1xf32>
    %48 = arith.maximumf %46, %47 : vector<8x1xf32>
    %49 = arith.subf %46, %48 : vector<8x1xf32>
    %50 = math.exp %49 : vector<8x1xf32>
    %51 = arith.subf %47, %48 : vector<8x1xf32>
    %52 = math.exp %51 : vector<8x1xf32>
    %53 = arith.addf %50, %52 : vector<8x1xf32>
    %54 = tpu.reciprocal %53 {approx = true} : vector<8x1xf32> -> vector<8x1xf32>
    %55 = arith.mulf %50, %54 : vector<8x1xf32>
    %56 = arith.mulf %52, %54 : vector<8x1xf32>
    %57 = vector.extract_strided_slice %45 {offsets = [0, 0], sizes = [8, 1], strides = [1, 1]} : vector<32x1xf32> to vector<8x1xf32>
    %58 = vector.extract_strided_slice %45 {offsets = [8, 0], sizes = [8, 1], strides = [1, 1]} : vector<32x1xf32> to vector<8x1xf32>
    %59 = arith.maximumf %57, %58 : vector<8x1xf32>
    %60 = arith.subf %57, %59 : vector<8x1xf32>
    %61 = math.exp %60 : vector<8x1xf32>
    %62 = arith.subf %58, %59 : vector<8x1xf32>
    %63 = math.exp %62 : vector<8x1xf32>
    %64 = arith.addf %61, %63 : vector<8x1xf32>
    %65 = tpu.reciprocal %64 {approx = true} : vector<8x1xf32> -> vector<8x1xf32>
    %66 = arith.mulf %61, %65 : vector<8x1xf32>
    %67 = arith.mulf %63, %65 : vector<8x1xf32>
    %68 = vector.extract_strided_slice %42 {offsets = [16, 0], sizes = [8, 1], strides = [1, 1]} : vector<32x1xf32> to vector<8x1xf32>
    %69 = vector.extract_strided_slice %42 {offsets = [24, 0], sizes = [8, 1], strides = [1, 1]} : vector<32x1xf32> to vector<8x1xf32>
    %70 = arith.maximumf %68, %69 : vector<8x1xf32>
    %71 = arith.subf %68, %70 : vector<8x1xf32>
    %72 = math.exp %71 : vector<8x1xf32>
    %73 = arith.subf %69, %70 : vector<8x1xf32>
    %74 = math.exp %73 : vector<8x1xf32>
    %75 = arith.addf %72, %74 : vector<8x1xf32>
    %76 = tpu.reciprocal %75 {approx = true} : vector<8x1xf32> -> vector<8x1xf32>
    %77 = arith.mulf %72, %76 : vector<8x1xf32>
    %78 = arith.mulf %74, %76 : vector<8x1xf32>
    %79 = vector.extract_strided_slice %45 {offsets = [16, 0], sizes = [8, 1], strides = [1, 1]} : vector<32x1xf32> to vector<8x1xf32>
    %80 = vector.extract_strided_slice %45 {offsets = [24, 0], sizes = [8, 1], strides = [1, 1]} : vector<32x1xf32> to vector<8x1xf32>
    %81 = arith.maximumf %79, %80 : vector<8x1xf32>
    %82 = arith.subf %79, %81 : vector<8x1xf32>
    %83 = math.exp %82 : vector<8x1xf32>
    %84 = arith.subf %80, %81 : vector<8x1xf32>
    %85 = math.exp %84 : vector<8x1xf32>
    %86 = arith.addf %83, %85 : vector<8x1xf32>
    %87 = tpu.reciprocal %86 {approx = true} : vector<8x1xf32> -> vector<8x1xf32>
    %88 = arith.mulf %83, %87 : vector<8x1xf32>
    %89 = arith.mulf %85, %87 : vector<8x1xf32>
    %90 = tpu.concatenate %55, %56, %77, %78 in 0 : vector<8x1xf32>, vector<8x1xf32>, vector<8x1xf32>, vector<8x1xf32> -> vector<32x1xf32>
    %91 = tpu.concatenate %66, %67, %88, %89 in 0 : vector<8x1xf32>, vector<8x1xf32>, vector<8x1xf32>, vector<8x1xf32> -> vector<32x1xf32>
    %92 = vector.extract_strided_slice %38 {offsets = [0, 0], sizes = [32, 128], strides = [1, 1]} : vector<32x256xf32> to vector<32x128xf32>
    %93 = vector.broadcast %90 : vector<32x1xf32> to vector<32x128xf32>
    %94 = arith.mulf %92, %93 : vector<32x128xf32>
    %95 = vector.extract_strided_slice %38 {offsets = [0, 128], sizes = [32, 128], strides = [1, 1]} : vector<32x256xf32> to vector<32x128xf32>
    %96 = vector.broadcast %91 : vector<32x1xf32> to vector<32x128xf32>
    %97 = arith.mulf %95, %96 : vector<32x128xf32>
    %98 = tpu.concatenate %94, %97 in 1 : vector<32x128xf32>, vector<32x128xf32> -> vector<32x256xf32>
    %99 = vector.shape_cast %98 : vector<32x256xf32> to vector<64x128xf32>
    %100 = vector.extract_strided_slice %99 {offsets = [0, 0], sizes = [16, 128], strides = [1, 1]} : vector<64x128xf32> to vector<16x128xf32>
    %101 = vector.extract_strided_slice %99 {offsets = [16, 0], sizes = [16, 128], strides = [1, 1]} : vector<64x128xf32> to vector<16x128xf32>
    %102 = tpu.concatenate %100, %101 in 1 : vector<16x128xf32>, vector<16x128xf32> -> vector<16x256xf32>
    %103 = vector.extract_strided_slice %99 {offsets = [32, 0], sizes = [16, 128], strides = [1, 1]} : vector<64x128xf32> to vector<16x128xf32>
    %104 = vector.extract_strided_slice %99 {offsets = [48, 0], sizes = [16, 128], strides = [1, 1]} : vector<64x128xf32> to vector<16x128xf32>
    %105 = tpu.concatenate %103, %104 in 1 : vector<16x128xf32>, vector<16x128xf32> -> vector<16x256xf32>
    %106 = tpu.concatenate %102, %105 in 0 : vector<16x256xf32>, vector<16x256xf32> -> vector<32x256xf32>
    %107 = arith.truncf %106 : vector<32x256xf32> to vector<32x256xbf16>
    %c0_21 = arith.constant 0 : index
    %c0_22 = arith.constant 0 : index
    %108 = vector.load %arg8[%c0_21, %c0_22] : memref<256x128xbf16, #tpu.memory_space<vmem>>, vector<256x128xbf16>
    %cst_23 = arith.constant dense<0.000000e+00> : vector<32x128xf32>
    %109 = tpu.matmul %107, %108, %cst_23 {dimension_numbers = #tpu.dot_dimension_numbers<[1], [0], [0], [1], [0, 0, 1, 1], [], []>} : vector<32x256xbf16>, vector<256x128xbf16>, vector<32x128xf32> -> vector<32x128xf32>
    %c0_24 = arith.constant 0 : index
    %c0_25 = arith.constant 0 : index
    %110 = vector.load %arg9[%c0_24, %c0_25] : memref<1x128xf32, #tpu.memory_space<vmem>>, vector<1x128xf32>
    %111 = vector.broadcast %110 : vector<1x128xf32> to vector<32x128xf32>
    %112 = arith.addf %109, %111 : vector<32x128xf32>
    %113 = arith.addf %5, %112 : vector<32x128xf32>
    %c0_26 = arith.constant 0 : index
    %c0_27 = arith.constant 0 : index
    %114 = vector.load %arg10[%c0_26, %c0_27] : memref<32x128xf32, #tpu.memory_space<vmem>>, vector<32x128xf32>
    tpu.vector_store %arg10[%c0_26, %c0_27], %113 {strides = array<i32>} : memref<32x128xf32, #tpu.memory_space<vmem>>, vector<32x128xf32>,
    return
  }
  func.func @transform_0(%arg0: i32) -> (i32, i32) {
    %c0_i32 = arith.constant 0 : i32
    %c0_i32_0 = arith.constant 0 : i32
    return %arg0, %c0_i32 : i32, i32
  }
  func.func @transform_1(%arg0: i32) -> (i32, i32) {
    %c0_i32 = arith.constant 0 : i32
    %c0_i32_0 = arith.constant 0 : i32
    %c0_i32_1 = arith.constant 0 : i32
    return %c0_i32, %c0_i32_0 : i32, i32
  }
  func.func @transform_2(%arg0: i32) -> (i32, i32) {
    %c0_i32 = arith.constant 0 : i32
    %c0_i32_0 = arith.constant 0 : i32
    %c0_i32_1 = arith.constant 0 : i32
    return %c0_i32, %c0_i32_0 : i32, i32
  }
  func.func @transform_3(%arg0: i32) -> (i32, i32) {
    %c0_i32 = arith.constant 0 : i32
    %c0_i32_0 = arith.constant 0 : i32
    %c0_i32_1 = arith.constant 0 : i32
    return %c0_i32, %c0_i32_0 : i32, i32
  }
  func.func @transform_4(%arg0: i32) -> (i32, i32) {
    %c0_i32 = arith.constant 0 : i32
    %c0_i32_0 = arith.constant 0 : i32
    %c0_i32_1 = arith.constant 0 : i32
    return %c0_i32, %c0_i32_0 : i32, i32
  }
  func.func @transform_5(%arg0: i32) -> (i32, i32) {
    %c0_i32 = arith.constant 0 : i32
    %c0_i32_0 = arith.constant 0 : i32
    %c0_i32_1 = arith.constant 0 : i32
    return %c0_i32, %c0_i32_0 : i32, i32
  }
  func.func @transform_6(%arg0: i32) -> (i32, i32) {
    %c0_i32 = arith.constant 0 : i32
    %c0_i32_0 = arith.constant 0 : i32
    %c0_i32_1 = arith.constant 0 : i32
    return %c0_i32, %c0_i32_0 : i32, i32
  }
  func.func @transform_7(%arg0: i32) -> (i32, i32) {
    %c0_i32 = arith.constant 0 : i32
    %c0_i32_0 = arith.constant 0 : i32
    %c0_i32_1 = arith.constant 0 : i32
    return %c0_i32, %c0_i32_0 : i32, i32
  }
  func.func @transform_8(%arg0: i32) -> (i32, i32) {
    %c0_i32 = arith.constant 0 : i32
    %c0_i32_0 = arith.constant 0 : i32
    %c0_i32_1 = arith.constant 0 : i32
    return %c0_i32, %c0_i32_0 : i32, i32
  }
  func.func @transform_9(%arg0: i32) -> (i32, i32) {
    %c0_i32 = arith.constant 0 : i32
    %c0_i32_0 = arith.constant 0 : i32
    return %arg0, %c0_i32 : i32, i32
  }
}

</mosaic_0001>

<bundles_post_ra>
// kernel: tpu_custom_call.1
= control target key start
LH: loop header
LB: loop body
LE: loop exit
PB: predicated region body
PF: predicated region fallthrough
CT: control target
= control target key end

     0   :  { %14 = vsyncpa [#allocation3], 0  ;;  %s1863_s0 = inlined_call_operand.hbm [shape: bf16[32,192], index: 0, kind: input, shape index: {}]   ;;  %s1864_s1 = inlined_call_operand.hbm [shape: bf16[192,128], index: 1, kind: input, shape index: {}]   ;;  %s1865_s2 = inlined_call_operand.vmem [shape: f32[1,128], index: 2, kind: input, shape index: {}]   ;;  %s1866_s3 = inlined_call_operand.vmem [shape: f32[1,128], index: 3, kind: input, shape index: {}]   ;;  %s1867_s4 = inlined_call_operand.vmem [shape: f32[1,128], index: 4, kind: input, shape index: {}]   ;;  %s1868_s5 = inlined_call_operand.hbm [shape: bf16[128,768], index: 5, kind: input, shape index: {}]   ;;  %s1869_s6 = inlined_call_operand.vmem [shape: f32[1,768], index: 6, kind: input, shape index: {}]   ;;  %s1870_s7 = inlined_call_operand.hbm [shape: bf16[256,128], index: 7, kind: input, shape index: {}]   ;;  %s1871_s8 = inlined_call_operand.vmem [shape: f32[1,128], index: 8, kind: input, shape index: {}]   ;;  %s1872_s9 = inlined_call_operand.hbm [shape: f32[32,128], index: 9, kind: output, shape index: {}]  }
   0x1   :  { %15 = vsyncpa [#allocation6], 0 }
   0x2   :  { %16 = vsyncpa [#allocation9], 0 }
   0x3   :  { %17 = vsyncpa [#allocation4], 0  ;;  %s1622_s30 = smov [#allocation5]   ;;  %s1504_s13 = scalar_lea.hbm %s1864_s1, 1536 }
   0x4   :  { %s35_s10 = sshll.u32 %s1622_s30, 4  ;;  %p1505_p0 = scmp.ne.s32.totalorder %s1864_s1, %s1504_s13  ;;  %s36_s10 = int_to_ptr.vmem [resolvable:$true] %s35_s10 }
   0x5   :  { %p1508_p1 = scmp.lt.u32.totalorder %s1504_s13, %s1864_s1 }
   0x7   :  { %p1510_p2 = pnand %p1508_p1, %p1505_p0 }
   0x9   :  { %1513 = shalt.err (!%p1510_p2)
}
   0xa   :  { %s1514_s18 = scalar_lea.vmem %s36_s10, 1536  ;;  %p1519_p4 = scmp.lt.s32.totalorder %s36_s10, %s36_s10 }
   0xb   :  { %p1515_p3 = scmp.ne.s32.totalorder %s36_s10, %s1514_s18  ;;  %p1520_p5 = scmp.lt.s32.totalorder %s1514_s18, %s1514_s18 }
   0xd   :  { %p1521_p6 = por %p1520_p5, %p1519_p4 }
   0xf   :  { %p1522_p7 = pnand %p1521_p6, %p1515_p3 }
  0x11   :  { %1525 = shalt.err (!%p1522_p7)
}
  0x12   :  { %s1623_s19 = smov 64   ;;  %s1624_s20 = smov 4  }
  0x13   :  { %41 = dma.hbm_to_vmem [thread:$0]  %s1864_s1, 1536, %s36_s10, [#allocation6], %s1623_s19, %s1623_s19, %s1624_s20  }
  0x14   :  { %s1625_s23 = smov [#allocation2]   ;;  %s1526_s27 = scalar_lea.hbm %s1863_s0, 512 }
  0x15   :  { %s23_s24 = sshll.u32 %s1625_s23, 4  ;;  %p1527_p8 = scmp.ne.s32.totalorder %s1863_s0, %s1526_s27  ;;  %s24_s24 = int_to_ptr.vmem [resolvable:$true] %s23_s24 }
  0x16   :  { %p1530_p9 = scmp.lt.u32.totalorder %s1526_s27, %s1863_s0 }
  0x18   :  { %p1532_p10 = pnand %p1530_p9, %p1527_p8 }
  0x1a   :  { %1535 = shalt.err (!%p1532_p10)
}
  0x1b   :  { %s1536_s12 = scalar_lea.vmem %s24_s24, 512  ;;  %p1541_p12 = scmp.lt.s32.totalorder %s24_s24, %s24_s24 }
  0x1c   :  { %p1537_p11 = scmp.ne.s32.totalorder %s24_s24, %s1536_s12  ;;  %p1542_p13 = scmp.lt.s32.totalorder %s1536_s12, %s1536_s12 }
  0x1e   :  { %p1543_p0 = por %p1542_p13, %p1541_p12 }
  0x20   :  { %p1544_p1 = pnand %p1543_p0, %p1537_p11 }
  0x22   :  { %1547 = shalt.err (!%p1544_p1)
}
  0x23   :  { %s1626_s1 = smov 128   ;;  %s1627_s10 = smov 8  }
  0x24   :  { %29 = dma.hbm_to_vmem [thread:$0]  %s1863_s0, 512, %s24_s24, [#allocation3], %s1626_s1, %s1626_s1, %s1627_s10  }
  0x25   :  { %s1628_s15 = smov [#allocation7]   ;;  %s1548_s21 = scalar_lea.hbm %s1868_s5, 6144 }
  0x26   :  { %s53_s16 = sshll.u32 %s1628_s15, 4  ;;  %p1549_p2 = scmp.ne.s32.totalorder %s1868_s5, %s1548_s21  ;;  %s54_s16 = int_to_ptr.vmem [resolvable:$true] %s53_s16 }
  0x27   :  { %p1552_p3 = scmp.lt.u32.totalorder %s1548_s21, %s1868_s5 }
  0x29   :  { %p1554_p4 = pnand %p1552_p3, %p1549_p2 }
  0x2b   :  { %1557 = shalt.err (!%p1554_p4)
}
  0x2c   :  { %s1558_s27 = scalar_lea.vmem %s54_s16, 6144  ;;  %p1563_p6 = scmp.lt.s32.totalorder %s54_s16, %s54_s16 }
  0x2d   :  { %p1559_p5 = scmp.ne.s32.totalorder %s54_s16, %s1558_s27  ;;  %p1564_p7 = scmp.lt.s32.totalorder %s1558_s27, %s1558_s27 }
  0x2f   :  { %p1565_p8 = por %p1564_p7, %p1563_p6 }
  0x31   :  { %p1566_p9 = pnand %p1565_p8, %p1559_p5 }
  0x33   :  { %1569 = shalt.err (!%p1566_p9)
}
  0x34   :  { %s1629_s0 = smov 384   ;;  %s1630_s24 = smov 24  }
  0x35   :  { %59 = dma.hbm_to_vmem [thread:$0]  %s1868_s5, 6144, %s54_s16, [#allocation6], %s1629_s0, %s1629_s0, %s1630_s24  }
  0x36   :  { %s1631_s30 = smov [#allocation8]   ;;  %s1570_s14 = scalar_lea.hbm %s1870_s7, 2048 }
  0x37   :  { %s67_s11 = sshll.u32 %s1631_s30, 4  ;;  %p1571_p10 = scmp.ne.s32.totalorder %s1870_s7, %s1570_s14  ;;  %s68_s11 = int_to_ptr.vmem [resolvable:$true] %s67_s11 }
  0x38   :  { %p1574_p11 = scmp.lt.u32.totalorder %s1570_s14, %s1870_s7 }
  0x3a   :  { %p1576_p12 = pnand %p1574_p11, %p1571_p10 }
  0x3c   :  { %1579 = shalt.err (!%p1576_p12)
}
  0x3d   :  { %s1580_s22 = scalar_lea.vmem %s68_s11, 2048  ;;  %p1585_p0 = scmp.lt.s32.totalorder %s68_s11, %s68_s11 }
  0x3e   :  { %p1581_p13 = scmp.ne.s32.totalorder %s68_s11, %s1580_s22  ;;  %p1586_p1 = scmp.lt.s32.totalorder %s1580_s22, %s1580_s22 }
  0x40   :  { %p1587_p2 = por %p1586_p1, %p1585_p0 }
  0x42   :  { %p1588_p3 = pnand %p1587_p2, %p1581_p13 }
  0x44   :  { %1591 = shalt.err (!%p1588_p3)
}
  0x45   :  { %73 = dma.hbm_to_vmem [thread:$0]  %s1870_s7, 2048, %s68_s11, [#allocation9], %s1623_s19, %s1623_s19, %s1624_s20  }
  0x46   :  { %1614 = dma.done.wait [#allocation3], 512  }
  0x47   :  { %1615 = vsyncadd [#allocation3], 4294966784 }
  0x48   :  { %1616 = dma.done.wait [#allocation6], 7680  }
  0x49   :  { %1617 = vsyncadd [#allocation6], 4294959616 }
  0x4a   :  { %1618 = dma.done.wait [#allocation9], 2048  }
  0x4b   :  { %1619 = vsyncadd [#allocation9], 4294965248  ;;  %v1632_v0 = vmov 0   ;;  %v1366_v1 = vld [vmem:[#allocation5] sm:$0xff]   ;;  %v1367_v2 = vld [vmem:[#allocation5 + $0x8] sm:$0xff]   ;;  %vm214_vm0 = vcmask 523264  }
  0x4c   :  { %221 = vmatprep.subr.bf16.mxu0 %v1632_v0  ;;  %699 = vmatprep.mubr.bf16.mxu1 %v1632_v0  ;;  %v1368_v3 = vld [vmem:[#allocation5 + $0x10] sm:$0xff]   ;;  %v1369_v4 = vld [vmem:[#allocation5 + $0x18] sm:$0xff]   ;;  %v1380_v5 = vld [vmem:[#allocation2 + $0x4] ss:$8 sps:$4 sm:$0xff]  }
  0x4d   :  { %1365 = vset.pattern.permute.xlu1 %v1632_v0  ;;  %1364 = vset.pattern.permute.xlu0 %v1632_v0  ;;  %v1370_v6 = vld [vmem:[#allocation5 + $0x20] sm:$0xff]   ;;  %v1371_v7 = vld [vmem:[#allocation5 + $0x28] sm:$0xff]   ;;  %v1372_v8 = vld [vmem:[#allocation5 + $0x30] sm:$0xff]  }
  0x4e   :  { %222 = vmatpush1.bf16.msra.mxu0 %v1366_v1  ;;  %1254 = vmatprep.mubr.msk.bf16.mxu0 %vm214_vm0, %v1380_v5  ;;  %v1373_v9 = vld [vmem:[#allocation5 + $0x38] sm:$0xff]   ;;  %v1374_v10 = vld [vmem:[#allocation5 + $0x40] sm:$0xff]   ;;  %v1375_v11 = vld [vmem:[#allocation5 + $0x48] sm:$0xff]  }
  0x4f   :  { %223 = vmatprep.subr.bf16.mxu0 %v1632_v0  ;;  %v1376_v12 = vld [vmem:[#allocation5 + $0x50] sm:$0xff]   ;;  %v1377_v13 = vld [vmem:[#allocation5 + $0x58] sm:$0xff]   ;;  %v1378_v14 = vld [vmem:[#allocation2] ss:$8 sps:$4 sm:$0xff]  }
  0x50   :  { %v1381_v15 = vld [vmem:[#allocation2 + $0x14] ss:$8 sps:$4 sm:$0xff]   ;;  %v1383_v16 = vld [vmem:[#allocation2 + $0x10] ss:$8 sps:$4 sm:$0xff]   ;;  %v1237_v21 = vld [vmem:[%s1865_s2] ss:$0 sm:$0xff] }
  0x51   :  { %v1384_v17 = vld [vmem:[#allocation7 + $0x4] ss:$24 sps:$4 sm:$0xff]   ;;  %v1386_v18 = vld [vmem:[#allocation7] ss:$24 sps:$4 sm:$0xff]   ;;  %v1387_v19 = vld [vmem:[#allocation7 + $0x10] ss:$24 sps:$4 sm:$0xff]  }
  0x52   :  { %224 = vmatpush1.bf16.msra.mxu0 %v1367_v2  ;;  %v1389_v20 = vld [vmem:[#allocation7 + $0x14] ss:$24 sps:$4 sm:$0xff]   ;;  %667 = vmatprep.subr.bf16.mxu1 %v1384_v17  ;;  %v1392_v39 = vld [vmem:[#allocation7 + $0x30] ss:$24 sps:$4 sm:$0xff]   ;;  %v1395_v40 = vld [vmem:[#allocation7 + $0x44] ss:$24 sps:$4 sm:$0xff]  }
  0x53   :  { %225 = vmatprep.subr.bf16.mxu0 %v1632_v0  ;;  %668 = vmatpush1.bf16.msra.mxu1 %v1386_v18  ;;  %v1390_v38 = vld [vmem:[#allocation7 + $0x34] ss:$24 sps:$4 sm:$0xff]   ;;  %v1393_v41 = vld [vmem:[#allocation7 + $0x40] ss:$24 sps:$4 sm:$0xff]   ;;  %v1396_v42 = vld [vmem:[#allocation7 + $0x64] ss:$24 sps:$4 sm:$0xff]  }
  0x54   :  { %669 = vmatprep.subr.bf16.mxu1 %v1390_v38  ;;  %v1398_v43 = vld [vmem:[#allocation7 + $0x60] ss:$24 sps:$4 sm:$0xff]   ;;  %v1401_v44 = vld [vmem:[#allocation7 + $0x74] ss:$24 sps:$4 sm:$0xff]   ;;  %v1399_v45 = vld [vmem:[#allocation7 + $0x70] ss:$24 sps:$4 sm:$0xff]  }
  0x55   :  { %v1402_v46 = vld [vmem:[#allocation7 + $0x94] ss:$24 sps:$4 sm:$0xff]   ;;  %v1404_v47 = vld [vmem:[#allocation7 + $0x90] ss:$24 sps:$4 sm:$0xff]   ;;  %v1407_v48 = vld [vmem:[#allocation7 + $0xa4] ss:$24 sps:$4 sm:$0xff]  }
  0x56   :  { %226 = vmatpush1.bf16.msra.mxu0 %v1368_v3  ;;  %v1405_v49 = vld [vmem:[#allocation7 + $0xa0] ss:$24 sps:$4 sm:$0xff]   ;;  %v1408_v50 = vld [vmem:[#allocation7 + $0xc4] ss:$24 sps:$4 sm:$0xff]   ;;  %v1413_v52 = vld [vmem:[#allocation7 + $0xd4] ss:$24 sps:$4 sm:$0xff]  }
  0x57   :  { %227 = vmatprep.subr.bf16.mxu0 %v1632_v0  ;;  %670 = vmatpush1.bf16.msra.mxu1 %v1392_v39  ;;  %v1410_v51 = vld [vmem:[#allocation7 + $0xc0] ss:$24 sps:$4 sm:$0xff]   ;;  %v1411_v53 = vld [vmem:[#allocation7 + $0xd0] ss:$24 sps:$4 sm:$0xff]   ;;  %v1414_v54 = vld [vmem:[#allocation7 + $0xf4] ss:$24 sps:$4 sm:$0xff]  }
  0x58   :  { %671 = vmatprep.subr.bf16.mxu1 %v1396_v42  ;;  %v1416_v55 = vld [vmem:[#allocation7 + $0xf0] ss:$24 sps:$4 sm:$0xff]   ;;  %v1419_v56 = vld [vmem:[#allocation7 + $0x104] ss:$24 sps:$4 sm:$0xff]   ;;  %v1417_v57 = vld [vmem:[#allocation7 + $0x100] ss:$24 sps:$4 sm:$0xff]  }
  0x59   :  { %v1420_v58 = vld [vmem:[#allocation7 + $0x124] ss:$24 sps:$4 sm:$0xff]   ;;  %v1422_v59 = vld [vmem:[#allocation7 + $0x120] ss:$24 sps:$4 sm:$0xff]   ;;  %v1423_v60 = vld [vmem:[#allocation7 + $0x130] ss:$24 sps:$4 sm:$0xff]  }
  0x5a   :  { %228 = vmatpush1.bf16.msra.mxu0 %v1369_v4  ;;  %v1425_v61 = vld [vmem:[#allocation7 + $0x134] ss:$24 sps:$4 sm:$0xff]   ;;  %v1431_v63 = vld [vmem:[#allocation7 + $0x164] ss:$24 sps:$4 sm:$0xff]   ;;  %v1428_v1 = vld [vmem:[#allocation7 + $0x150] ss:$24 sps:$4 sm:$0xff]  }
  0x5b   :  { %229 = vmatprep.subr.bf16.mxu0 %v1632_v0  ;;  %672 = vmatpush1.bf16.msra.mxu1 %v1398_v43  ;;  %v1426_v62 = vld [vmem:[#allocation7 + $0x154] ss:$24 sps:$4 sm:$0xff]   ;;  %v1429_v2 = vld [vmem:[#allocation7 + $0x160] ss:$24 sps:$4 sm:$0xff]  }
  0x5c   :  { %673 = vmatprep.subr.bf16.mxu1 %v1402_v46  ;;  %v1434_v3 = vld [vmem:[#allocation7 + $0xc] ss:$24 sps:$4 sm:$0xff]   ;;  %v1256_v39 = vld [vmem:[%s1866_s3] ss:$0 sm:$0xff] }
  0x5e   :  { %230 = vmatpush1.bf16.msra.mxu0 %v1370_v6 }
  0x5f   :  { %231 = vmatprep.subr.bf16.mxu0 %v1632_v0  ;;  %674 = vmatpush1.bf16.msra.mxu1 %v1404_v47 }
  0x60   :  { %675 = vmatprep.subr.bf16.mxu1 %v1408_v50  ;;  %v1432_v50 = vld [vmem:[#allocation7 + $0x8] ss:$24 sps:$4 sm:$0xff]  }
  0x62   :  { %232 = vmatpush1.bf16.msra.mxu0 %v1371_v7 }
  0x63   :  { %233 = vmatprep.subr.bf16.mxu0 %v1632_v0  ;;  %676 = vmatpush1.bf16.msra.mxu1 %v1410_v51 }
  0x64   :  { %677 = vmatprep.subr.bf16.mxu1 %v1414_v54 }
  0x66   :  { %234 = vmatpush1.bf16.msra.mxu0 %v1372_v8 }
  0x67   :  { %235 = vmatprep.subr.bf16.mxu0 %v1632_v0  ;;  %678 = vmatpush1.bf16.msra.mxu1 %v1416_v55 }
  0x68   :  { %679 = vmatprep.subr.bf16.mxu1 %v1420_v58  ;;  %v1435_v58 = vld [vmem:[#allocation7 + $0x38] ss:$24 sps:$4 sm:$0xff]  }
  0x6a   :  { %236 = vmatpush1.bf16.msra.mxu0 %v1373_v9 }
  0x6b   :  { %237 = vmatprep.subr.bf16.mxu0 %v1632_v0  ;;  %680 = vmatpush1.bf16.msra.mxu1 %v1422_v59  ;;  %v1440_v59 = vld [vmem:[#allocation7 + $0x6c] ss:$24 sps:$4 sm:$0xff]  }
  0x6c   :  { %681 = vmatprep.subr.bf16.mxu1 %v1426_v62 }
  0x6e   :  { %238 = vmatpush1.bf16.msra.mxu0 %v1374_v10 }
  0x6f   :  { %239 = vmatprep.subr.bf16.mxu0 %v1632_v0  ;;  %682 = vmatpush1.bf16.msra.mxu1 %v1428_v1 }
  0x70   :  { %720 = vmatprep.subr.bf16.mxu1 %v1434_v3  ;;  %v1441_v3 = vld [vmem:[#allocation7 + $0x98] ss:$24 sps:$4 sm:$0xff]  }
  0x72   :  { %240 = vmatpush1.bf16.msra.mxu0 %v1375_v11 }
  0x73   :  { %241 = vmatprep.subr.bf16.mxu0 %v1632_v0 }
  0x76   :  { %242 = vmatpush1.bf16.msra.mxu0 %v1376_v12 }
  0x77   :  { %243 = vmatprep.subr.bf16.mxu0 %v1632_v0 }
  0x7a   :  { %244 = vmatpush1.bf16.msra.mxu0 %v1377_v13 }
  0x7b   :  { %773 = vmatprep.subr.bf16.mxu0 %v1389_v20 }
  0x7d   :  { %254 = vmatmul.mubr.bf16.vlgmr.msra.gmra.mrb[0].mxu0 %v1378_v14 }
  0x7e   :  { %1255 = vmatprep.mubr.msk.bf16.mxu0 %vm214_vm0, %v1381_v15  ;;  %774 = vmatpush1.bf16.msra.mxu0 %v1387_v19 }
  0x7f   :  { %775 = vmatprep.subr.bf16.mxu0 %v1395_v40 }
  0x82   :  { %776 = vmatpush1.bf16.msra.mxu0 %v1393_v41 }
  0x83   :  { %777 = vmatprep.subr.bf16.mxu0 %v1401_v44  ;;  %v1257_v44 = vld [vmem:[%s1867_s4] ss:$0 sm:$0xff] }
  0x85   :  { %262 = vmatmul.mubr.bf16.gmra.mrb[4].mxu0 %v1383_v16 }
  0x86   :  { %805 = vmatprep.mubr.bf16.mxu0 %v1632_v0  ;;  %778 = vmatpush1.bf16.msra.mxu0 %v1399_v45 }
  0x87   :  { %779 = vmatprep.subr.bf16.mxu0 %v1407_v48 }
  0x8a   :  { %780 = vmatpush1.bf16.msra.mxu0 %v1405_v49 }
  0x8b   :  { %781 = vmatprep.subr.bf16.mxu0 %v1413_v52 }
  0x8e   :  { %782 = vmatpush1.bf16.msra.mxu0 %v1411_v53  ;;  %v1437_v53 = vld [vmem:[#allocation7 + $0x3c] ss:$24 sps:$4 sm:$0xff]  }
  0x8f   :  { %783 = vmatprep.subr.bf16.mxu0 %v1419_v56 }
  0x92   :  { %784 = vmatpush1.bf16.msra.mxu0 %v1417_v57 }
  0x93   :  { %785 = vmatprep.subr.bf16.mxu0 %v1425_v61 }
  0x96   :  { %786 = vmatpush1.bf16.msra.mxu0 %v1423_v60 }
  0x97   :  { %787 = vmatprep.subr.bf16.mxu0 %v1431_v63  ;;  %v1438_v63 = vld [vmem:[#allocation7 + $0x68] ss:$24 sps:$4 sm:$0xff]  }
  0x9a   :  { %788 = vmatpush1.bf16.msra.mxu0 %v1429_v2  ;;  %v1443_v2 = vld [vmem:[#allocation7 + $0x9c] ss:$24 sps:$4 sm:$0xff]  }
 0x150   :  { %v255_v22 = vpop.f32.mrb[0].mxu0 }
 0x151   :  { %v1763_v23 = vadd.f32 %v1237_v21, %v255_v22  ;;  %v257_v24 = vpop.f32.mrb[1].mxu0 }
 0x152   :  { %v258_v25 = vpop.f32.mrb[2].mxu0 }
 0x153   :  { %v1765_v26 = vadd.f32 %v1237_v21, %v258_v25  ;;  %v260_v27 = vpop.f32.mrb[3].mxu0  ;;  %270 = vadd.xlane.f32.xlu0 %v1763_v23  ;;  %v283_v28 = vmul.f32 %v1763_v23, %v1763_v23 }
 0x155   :  { %287 = vadd.xlane.f32.xlu1 %v283_v28  ;;  %v284_v29 = vmul.f32 %v1765_v26, %v1765_v26 }
 0x157   :  { %272 = vadd.xlane.f32.xlu0 %v1765_v26 }
 0x158   :  { %v263_v30 = vpop.f32.mrb[4].mxu0 }
 0x159   :  { %v1773_v31 = vadd.f32 %v1237_v21, %v263_v30  ;;  %v265_v32 = vpop.f32.mrb[5].mxu0  ;;  %289 = vadd.xlane.f32.xlu1 %v284_v29 }
 0x15a   :  { %v266_v33 = vpop.f32.mrb[6].mxu0 }
 0x15b   :  { %v1775_v34 = vadd.f32 %v1237_v21, %v266_v33  ;;  %274 = vadd.xlane.f32.xlu0 %v1773_v31  ;;  %v285_v35 = vmul.f32 %v1773_v31, %v1773_v31  ;;  %v268_v36 = vpop.f32.mrb[7].mxu0 }
 0x15d   :  { %276 = vadd.xlane.f32.xlu1 %v1775_v34  ;;  %v286_v37 = vmul.f32 %v1775_v34, %v1775_v34 }
 0x15f   :  { %291 = vadd.xlane.f32.xlu0 %v285_v35 }
 0x161   :  { %293 = vadd.xlane.f32.xlu1 %v286_v37 }
 0x1e0   :  { %v271_v4 = vpop.xlane.xlu0 %270 }
 0x1e1   :  { %v279_v5 = vmul.f32 0.0078125, %v271_v4  ;;  %v1446_v4 = vld [vmem:[#allocation7 + $0xcc] ss:$24 sps:$4 sm:$0xff]  }
 0x1e2   :  { %v288_v6 = vpop.xlane.xlu1 %287 }
 0x1e3   :  { %v299_v7 = vmul.f32 %v279_v5, %v279_v5  ;;  %v295_v8 = vmul.f32 0.0078125, %v288_v6  ;;  %v307_v35 = vsub.f32 %v1763_v23, %v279_v5  ;;  %v1444_v5 = vld [vmem:[#allocation7 + $0xc8] ss:$24 sps:$4 sm:$0xff]   ;;  %v1449_v6 = vld [vmem:[#allocation7 + $0xfc] ss:$24 sps:$4 sm:$0xff]  }
 0x1e4   :  { %v273_v9 = vpop.xlane.xlu0 %272 }
 0x1e5   :  { %v303_v10 = vsub.f32 %v295_v8, %v299_v7  ;;  %v280_v11 = vmul.f32 0.0078125, %v273_v9  ;;  %v1447_v7 = vld [vmem:[#allocation7 + $0xf8] ss:$24 sps:$4 sm:$0xff]   ;;  %v1452_v8 = vld [vmem:[#allocation7 + $0x12c] ss:$24 sps:$4 sm:$0xff]  }
 0x1e6   :  { %v290_v12 = vpop.xlane.xlu1 %289  ;;  %v1450_v9 = vld [vmem:[#allocation7 + $0x128] ss:$24 sps:$4 sm:$0xff]  }
 0x1e7   :  { %v311_v13 = vadd.f32 1e-05, %v303_v10  ;;  %v300_v14 = vmul.f32 %v280_v11, %v280_v11  ;;  %v296_v15 = vmul.f32 0.0078125, %v290_v12  ;;  %v308_v40 = vsub.f32 %v1765_v26, %v280_v11  ;;  %v1455_v10 = vld [vmem:[#allocation7 + $0x15c] ss:$24 sps:$4 sm:$0xff]  }
 0x1e8   :  { %v275_v16 = vpop.xlane.xlu0 %274  ;;  %v1453_v11 = vld [vmem:[#allocation7 + $0x158] ss:$24 sps:$4 sm:$0xff]  }
 0x1e9   :  { %1472 = vrsqrt.f32 %v311_v13  ;;  %v304_v17 = vsub.f32 %v296_v15, %v300_v14  ;;  %v281_v18 = vmul.f32 0.0078125, %v275_v16 }
 0x1ea   :  { %v277_v19 = vpop.xlane.xlu1 %276 }
 0x1eb   :  { %v312_v20 = vadd.f32 1e-05, %v304_v17  ;;  %v301_v21 = vmul.f32 %v281_v18, %v281_v18  ;;  %v282_v22 = vmul.f32 0.0078125, %v277_v19  ;;  %v309_v46 = vsub.f32 %v1773_v31, %v281_v18 }
 0x1ec   :  { %v292_v24 = vpop.xlane.xlu0 %291 }
 0x1ed   :  { %1474 = vrsqrt.f32 %v312_v20  ;;  %v302_v25 = vmul.f32 %v282_v22, %v282_v22  ;;  %v297_v27 = vmul.f32 0.0078125, %v292_v24  ;;  %v310_v51 = vsub.f32 %v1775_v34, %v282_v22 }
 0x1ee   :  { %v294_v28 = vpop.xlane.xlu1 %293 }
 0x1ef   :  { %v305_v29 = vsub.f32 %v297_v27, %v301_v21  ;;  %v298_v30 = vmul.f32 0.0078125, %v294_v28 }
 0x1f1   :  { %v313_v32 = vadd.f32 1e-05, %v305_v29  ;;  %v306_v33 = vsub.f32 %v298_v30, %v302_v25  ;;  %v397_v29 = vlaneseq }
 0x1f3   :  { %v1473_v36 = vpop.eup %1472  ;;  %1476 = vrsqrt.f32 %v313_v32  ;;  %v314_v37 = vadd.f32 1e-05, %v306_v33  ;;  %v1813_v30 = vshrl.u32 %v397_v29, 7 }
 0x1f4   :  { %v319_v38 = vmul.f32 %v1473_v36, %v307_v35  ;;  %v1820_v35 = vld [vmem:[%s1869_s6] sm:$0x3f] }
 0x1f5   :  { %1478 = vrsqrt.f32 %v314_v37  ;;  %v399_v32 = vsub.s32 0, %v1813_v30  ;;  %v407_v33 = vsub.s32 2, %v1813_v30  ;;  %v403_v36 = vsub.s32 1, %v1813_v30 }
 0x1f6   :  { %v330_v43 = vmul.f32 %v1256_v39, %v319_v38  ;;  %v411_v37 = vsub.s32 3, %v1813_v30 }
 0x1f7   :  { %v1475_v41 = vpop.eup %1474  ;;  %v400_v38 = vrot.slane %v1820_v35, %v399_v32 }
 0x1f8   :  { %v320_v42 = vmul.f32 %v1475_v41, %v308_v40  ;;  %v341_v47 = vadd.f32 %v1257_v44, %v330_v43  ;;  %v404_v40 = vrot.slane %v1820_v35, %v403_v36  ;;  %v412_v41 = vrot.slane %v1820_v35, %v411_v37 }
 0x1fa   :  { %v331_v45 = vmul.f32 %v1256_v39, %v320_v42 }
 0x1fc   :  { %v342_v48 = vadd.f32 %v1257_v44, %v331_v45 }
 0x1fd   :  { %v1477_v49 = vpop.eup %1476 }
 0x1fe   :  { %v345_v52 = vpack.c.bf16 %v342_v48, %v341_v47  ;;  %v321_v54 = vmul.f32 %v1477_v49, %v309_v46 }
 0x1ff   :  { %v1479_v55 = vpop.eup %1478 }
 0x200   :  { %700 = vmatmul.mubr.bf16.vlgmr.msra.gmra.mrb[0].mxu1 %v345_v52  ;;  %806 = vmatmul.mubr.bf16.vlgmr.msra.gmra.mrb[8].mxu0 %v345_v52  ;;  %v322_v56 = vmul.f32 %v1479_v55, %v310_v51  ;;  %v332_v57 = vmul.f32 %v1256_v39, %v321_v54 }
 0x201   :  { %721 = vmatpush1.bf16.msra.mxu1 %v1432_v50  ;;  %709 = vmatprep.mubr.bf16.mxu1 %v1632_v0 }
 0x202   :  { %722 = vmatprep.subr.bf16.mxu1 %v1437_v53  ;;  %815 = vmatprep.mubr.bf16.mxu0 %v1632_v0  ;;  %v333_v60 = vmul.f32 %v1256_v39, %v322_v56  ;;  %v343_v61 = vadd.f32 %v1257_v44, %v332_v57  ;;  %v408_v39 = vrot.slane %v1820_v35, %v407_v33 }
 0x204   :  { %v344_v62 = vadd.f32 %v1257_v44, %v333_v60 }
 0x205   :  { %723 = vmatpush1.bf16.msra.mxu1 %v1435_v58 }
 0x206   :  { %724 = vmatprep.subr.bf16.mxu1 %v1440_v59  ;;  %v346_v1 = vpack.c.bf16 %v344_v62, %v343_v61 }
 0x208   :  { %710 = vmatmul.mubr.bf16.gmra.mrb[4].mxu1 %v346_v1  ;;  %816 = vmatmul.mubr.bf16.gmra.mrb[12].mxu0 %v346_v1 }
 0x209   :  { %725 = vmatpush1.bf16.msra.mxu1 %v1438_v63  ;;  %752 = vmatprep.mubr.bf16.mxu1 %v1632_v0 }
 0x20a   :  { %726 = vmatprep.subr.bf16.mxu1 %v1443_v2 }
 0x20d   :  { %727 = vmatpush1.bf16.msra.mxu1 %v1441_v3 }
 0x20e   :  { %728 = vmatprep.subr.bf16.mxu1 %v1446_v4 }
 0x211   :  { %729 = vmatpush1.bf16.msra.mxu1 %v1444_v5 }
 0x212   :  { %730 = vmatprep.subr.bf16.mxu1 %v1449_v6 }
 0x215   :  { %731 = vmatpush1.bf16.msra.mxu1 %v1447_v7 }
 0x216   :  { %732 = vmatprep.subr.bf16.mxu1 %v1452_v8 }
 0x219   :  { %733 = vmatpush1.bf16.msra.mxu1 %v1450_v9 }
 0x21a   :  { %734 = vmatprep.subr.bf16.mxu1 %v1455_v10 }
 0x21d   :  { %735 = vmatpush1.bf16.msra.mxu1 %v1453_v11  ;;  %v1456_v11 = vld [vmem:[#allocation8 + $0x40] sm:$0xff]  }
 0x21e   :  { %1323 = vmatprep.subr.bf16.mxu1 %v1456_v11  ;;  %v1464_v11 = vld [vmem:[#allocation8 + $0x60] sm:$0xff]  }
 0x220   :  { %753 = vmatmul.mubr.bf16.vlgmr.msra.gmra.mrb[8].mxu1 %v345_v52 }
 0x221   :  { %762 = vmatprep.mubr.bf16.mxu1 %v1632_v0 }
 0x228   :  { %763 = vmatmul.mubr.bf16.gmra.mrb[12].mxu1 %v346_v1 }
 0x2d3   :  { %v701_v12 = vpop.f32.mrb[0].mxu1  ;;  %v1797_v13 = vpop.f32.mrb[8].mxu0 }
 0x2d4   :  { %v703_v14 = vpop.f32.mrb[1].mxu1  ;;  %v1799_v15 = vpop.f32.mrb[9].mxu0  ;;  %v702_v43 = vadd.f32 %v701_v12, %v400_v38  ;;  %v1457_v12 = vld [vmem:[#allocation8] sm:$0xff]  }
 0x2d5   :  { %v705_v16 = vpop.f32.mrb[2].mxu1  ;;  %v1801_v17 = vpop.f32.mrb[10].mxu0  ;;  %v704_v46 = vadd.f32 %v703_v14, %v404_v40  ;;  %v1458_v14 = vld [vmem:[#allocation8 + $0x48] sm:$0xff]   ;;  %1324 = vmatpush3.bf16.msra.mxu1 %v1457_v12  ;;  %v1465_v12 = vld [vmem:[#allocation8 + $0x20] sm:$0xff]  }
 0x2d6   :  { %v707_v18 = vpop.f32.mrb[3].mxu1  ;;  %v1803_v19 = vpop.f32.mrb[11].mxu0  ;;  %v706_v49 = vadd.f32 %v705_v16, %v400_v38  ;;  %v1459_v16 = vld [vmem:[#allocation8 + $0x8] sm:$0xff]   ;;  %1325 = vmatprep.subr.bf16.mxu1 %v1458_v14 }
 0x2d7   :  { %v708_v53 = vadd.f32 %v707_v18, %v404_v40  ;;  %v1460_v18 = vld [vmem:[#allocation8 + $0x50] sm:$0xff]  }
 0x2d9   :  { %1326 = vmatpush3.bf16.msra.mxu1 %v1459_v16 }
 0x2da   :  { %1327 = vmatprep.subr.bf16.mxu1 %v1460_v18 }
 0x2db   :  { %v711_v20 = vpop.f32.mrb[4].mxu1  ;;  %v1805_v21 = vpop.f32.mrb[12].mxu0 }
 0x2dc   :  { %v713_v22 = vpop.f32.mrb[5].mxu1  ;;  %v1807_v24 = vpop.f32.mrb[13].mxu0  ;;  %v712_v59 = vadd.f32 %v711_v20, %v400_v38  ;;  %v1461_v20 = vld [vmem:[#allocation8 + $0x10] sm:$0xff]  }
 0x2dd   :  { %v715_v0 = vpop.f32.mrb[6].mxu1  ;;  %v1809_v25 = vpop.f32.mrb[14].mxu0  ;;  %v714_v62 = vadd.f32 %v713_v22, %v404_v40  ;;  %v1462_v22 = vld [vmem:[#allocation8 + $0x58] sm:$0xff]   ;;  %1328 = vmatpush3.bf16.msra.mxu1 %v1461_v20  ;;  %v1466_v20 = vld [vmem:[#allocation8 + $0x68] sm:$0xff]  }
 0x2de   :  { %v717_v27 = vpop.f32.mrb[7].mxu1  ;;  %v1811_v28 = vpop.f32.mrb[15].mxu0  ;;  %v716_v2 = vadd.f32 %v715_v0, %v400_v38  ;;  %v1463_v0 = vld [vmem:[#allocation8 + $0x18] sm:$0xff]   ;;  %1329 = vmatprep.subr.bf16.mxu1 %v1462_v22  ;;  %v1467_v22 = vld [vmem:[#allocation8 + $0x28] sm:$0xff]  }
 0x2df   :  { %v718_v6 = vadd.f32 %v717_v27, %v404_v40 }
 0x2e1   :  { %1330 = vmatpush3.bf16.msra.mxu1 %v1463_v0 }
 0x2e2   :  { %1331 = vmatprep.subr.bf16.mxu1 %v1464_v11 }
 0x2e5   :  { %1332 = vmatpush3.bf16.msra.mxu1 %v1465_v12 }
 0x2e6   :  { %1333 = vmatprep.subr.bf16.mxu1 %v1466_v20 }
 0x2e9   :  { %1334 = vmatpush3.bf16.msra.mxu1 %v1467_v22 }
 0x2f3   :  { %v754_v42 = vpop.f32.mrb[8].mxu1 }
 0x2f4   :  { %v755_v44 = vadd.f32 %v754_v42, %v408_v39  ;;  %v756_v45 = vpop.f32.mrb[9].mxu1 }
 0x2f5   :  { %v757_v47 = vadd.f32 %v756_v45, %v412_v41  ;;  %v758_v48 = vpop.f32.mrb[10].mxu1 }
 0x2f6   :  { %v759_v50 = vadd.f32 %v758_v48, %v408_v39  ;;  %v760_v51 = vpop.f32.mrb[11].mxu1  ;;  %v826_v52 = vmul.f32 %v755_v44, %v702_v43 }
 0x2f7   :  { %v761_v54 = vadd.f32 %v760_v51, %v412_v41  ;;  %v827_v55 = vmul.f32 %v757_v47, %v704_v46 }
 0x2f8   :  { %834 = vadd.xlane.f32.xlu0 %v826_v52  ;;  %v828_v56 = vmul.f32 %v759_v50, %v706_v49 }
 0x2f9   :  { %v829_v57 = vmul.f32 %v761_v54, %v708_v53 }
 0x2fa   :  { %836 = vadd.xlane.f32.xlu1 %v828_v56 }
 0x2fb   :  { %v764_v58 = vpop.f32.mrb[12].mxu1 }
 0x2fc   :  { %v765_v60 = vadd.f32 %v764_v58, %v408_v39  ;;  %v766_v61 = vpop.f32.mrb[13].mxu1  ;;  %842 = vadd.xlane.f32.xlu0 %v827_v55 }
 0x2fd   :  { %v767_v63 = vadd.f32 %v766_v61, %v412_v41  ;;  %v768_v1 = vpop.f32.mrb[14].mxu1 }
 0x2fe   :  { %v769_v3 = vadd.f32 %v768_v1, %v408_v39  ;;  %v770_v4 = vpop.f32.mrb[15].mxu1  ;;  %844 = vadd.xlane.f32.xlu1 %v829_v57  ;;  %v830_v5 = vmul.f32 %v765_v60, %v712_v59 }
 0x2ff   :  { %v771_v7 = vadd.f32 %v770_v4, %v412_v41  ;;  %v831_v8 = vmul.f32 %v767_v63, %v714_v62 }
 0x300   :  { %838 = vadd.xlane.f32.xlu0 %v830_v5  ;;  %v832_v9 = vmul.f32 %v769_v3, %v716_v2 }
 0x301   :  { %v833_v10 = vmul.f32 %v771_v7, %v718_v6 }
 0x302   :  { %840 = vadd.xlane.f32.xlu1 %v832_v9 }
 0x304   :  { %846 = vadd.xlane.f32.xlu0 %v831_v8 }
 0x306   :  { %848 = vadd.xlane.f32.xlu1 %v833_v10 }
 0x385   :  { %v835_v27 = vpop.xlane.xlu0 %834 }
 0x387   :  { %v837_v29 = vpop.xlane.xlu1 %836 }
 0x388   :  { %v850_v32 = vmax.f32 %v835_v27, %v837_v29 }
 0x389   :  { %v843_v33 = vpop.xlane.xlu0 %842 }
 0x38a   :  { %v851_v36 = vsub.f32 %v835_v27, %v850_v32  ;;  %v854_v37 = vsub.f32 %v837_v29, %v850_v32  ;;  %v1468_v27 = vld [vmem:[#allocation8 + $0x70] sm:$0xff]  }
 0x38b   :  { %v845_v38 = vpop.xlane.xlu1 %844  ;;  %v1469_v32 = vld [vmem:[#allocation8 + $0x30] sm:$0xff]   ;;  %1335 = vmatprep.subr.bf16.mxu1 %v1468_v27 }
 0x38c   :  { %v852_v39 = vmul.f32 1.442695, %v851_v36  ;;  %v855_v40 = vmul.f32 1.442695, %v854_v37  ;;  %v861_v41 = vmax.f32 %v843_v33, %v845_v38  ;;  %1336 = vmatpush3.bf16.msra.mxu1 %v1469_v32  ;;  %v1470_v36 = vld [vmem:[#allocation8 + $0x78] sm:$0xff]  }
 0x38d   :  { %v839_v42 = vpop.xlane.xlu0 %838  ;;  %v1471_v37 = vld [vmem:[#allocation8 + $0x38] sm:$0xff]   ;;  %1337 = vmatprep.subr.bf16.mxu1 %v1470_v36 }
 0x38e   :  { %1480 = vpow2.f32 %v852_v39  ;;  %v862_v43 = vsub.f32 %v843_v33, %v861_v41  ;;  %v865_v44 = vsub.f32 %v845_v38, %v861_v41 }
 0x38f   :  { %1482 = vpow2.f32 %v855_v40  ;;  %v841_v45 = vpop.xlane.xlu1 %840 }
 0x390   :  { %v863_v46 = vmul.f32 1.442695, %v862_v43  ;;  %v866_v47 = vmul.f32 1.442695, %v865_v44  ;;  %v872_v48 = vmax.f32 %v839_v42, %v841_v45  ;;  %1338 = vmatpush3.bf16.msra.mxu1 %v1471_v37  ;;  %v419_v43 = vsub.s32 5, %v1813_v30 }
 0x391   :  { %v847_v51 = vpop.xlane.xlu0 %846  ;;  %v1633_v44 = vmov 1935823168  }
 0x392   :  { %1484 = vpow2.f32 %v863_v46  ;;  %v873_v49 = vsub.f32 %v839_v42, %v872_v48  ;;  %v876_v50 = vsub.f32 %v841_v45, %v872_v48  ;;  %v415_v42 = vsub.s32 4, %v1813_v30 }
 0x393   :  { %1486 = vpow2.f32 %v866_v47  ;;  %v849_v52 = vpop.xlane.xlu1 %848  ;;  %v967_v45 = vunpack.c.l.s4 %v1633_v44  ;;  %v420_v48 = vrot.slane %v1820_v35, %v419_v43 }
 0x394   :  { %v874_v53 = vmul.f32 1.442695, %v873_v49  ;;  %v877_v54 = vmul.f32 1.442695, %v876_v50  ;;  %v883_v55 = vmax.f32 %v847_v51, %v849_v52  ;;  %v416_v47 = vrot.slane %v1820_v35, %v415_v42 }
 0x395   :  { %v968_v49 = vunpack.c.0.s8 %v967_v45  ;;  %v820_v11 = vadd.f32 %v1807_v24, %v420_v48 }
 0x396   :  { %1488 = vpow2.f32 %v874_v53  ;;  %v884_v56 = vsub.f32 %v847_v51, %v883_v55  ;;  %v887_v57 = vsub.f32 %v849_v52, %v883_v55  ;;  %v812_v51 = vadd.f32 %v1801_v17, %v416_v47 }
 0x397   :  { %1490 = vpow2.f32 %v877_v54  ;;  %v814_v52 = vadd.f32 %v1803_v19, %v420_v48  ;;  %v971_v55 = vsub.s32 %v968_v49, %v1813_v30 }
 0x398   :  { %v1481_v58 = vpop.eup %1480  ;;  %v885_v59 = vmul.f32 1.442695, %v884_v56  ;;  %v888_v61 = vmul.f32 1.442695, %v887_v57  ;;  %v808_v57 = vadd.f32 %v1797_v13, %v416_v47  ;;  %v822_v13 = vadd.f32 %v1809_v25, %v416_v47 }
 0x399   :  { %v1483_v60 = vpop.eup %1482 }
 0x39a   :  { %v857_v62 = vadd.f32 %v1483_v60, %v1481_v58  ;;  %1492 = vpow2.f32 %v885_v59 }
 0x39c   :  { %v1485_v63 = vpop.eup %1484  ;;  %1494 = vrcp.f32 %v857_v62 }
 0x39d   :  { %v1487_v1 = vpop.eup %1486  ;;  %1496 = vpow2.f32 %v888_v61 }
 0x39e   :  { %v868_v2 = vadd.f32 %v1487_v1, %v1485_v63 }
 0x3a0   :  { %v1489_v3 = vpop.eup %1488  ;;  %1498 = vrcp.f32 %v868_v2 }
 0x3a1   :  { %v1491_v4 = vpop.eup %1490 }
 0x3a2   :  { %v879_v5 = vadd.f32 %v1491_v4, %v1489_v3 }
 0x3a4   :  { %v1493_v6 = vpop.eup %1492  ;;  %1500 = vrcp.f32 %v879_v5 }
 0x3a6   :  { %v1495_v7 = vpop.eup %1494 }
 0x3a7   :  { %v1497_v8 = vpop.eup %1496  ;;  %v859_v9 = vmul.f32 %v1495_v7, %v1481_v58  ;;  %v860_v10 = vmul.f32 %v1495_v7, %v1483_v60  ;;  %v810_v58 = vadd.f32 %v1799_v15, %v420_v48  ;;  %v824_v15 = vadd.f32 %v1811_v28, %v420_v48 }
 0x3a8   :  { %v890_v16 = vadd.f32 %v1497_v8, %v1493_v6 }
 0x3a9   :  { %896 = vperm.xlu1 %1365, %v859_v9   ;;  %901 = vperm.xlu0 %1364, %v860_v10   ;;  %v818_v10 = vadd.f32 %v1805_v21, %v416_v47  ;;  %v1306_v21 = vld [vmem:[%s1871_s8] ss:$0 sm:$0xff]  ;;  %s1634_s8 = smov [#allocation10]  }
 0x3aa   :  { %v1499_v14 = vpop.eup %1498  ;;  %1502 = vrcp.f32 %v890_v16  ;;  %s1223_s27 = sshll.u32 %s1634_s8, 4  ;;  %s1224_s27 = int_to_ptr.vmem [resolvable:$true] %s1223_s27 }
 0x3ab   :  { %v871_v18 = vmul.f32 %v1499_v14, %v1487_v1  ;;  %v870_v0 = vmul.f32 %v1499_v14, %v1485_v63  ;;  %s1592_s0 = scalar_lea.vmem %s1224_s27, 512  ;;  %p1597_p5 = scmp.lt.s32.totalorder %s1224_s27, %s1224_s27 }
 0x3ac   :  { %p1593_p4 = scmp.ne.s32.totalorder %s1224_s27, %s1592_s0  ;;  %p1598_p6 = scmp.lt.s32.totalorder %s1592_s0, %s1592_s0 }
 0x3ad   :  { %925 = vperm.xlu1 %1365, %v871_v18  }
 0x3ae   :  { %v1501_v29 = vpop.eup %1500  ;;  %p1599_p7 = por %p1598_p6, %p1597_p5 }
 0x3af   :  { %v882_v33 = vmul.f32 %v1501_v29, %v1491_v4  ;;  %v881_v38 = vmul.f32 %v1501_v29, %v1489_v3 }
 0x3b0   :  { %p1600_p8 = pnand %p1599_p7, %p1593_p4 }
 0x3b1   :  { %920 = vperm.xlu1 %1365, %v870_v0  }
 0x3b4   :  { %v1503_v39 = vpop.eup %1502 }
 0x3b5   :  { %911 = vperm.xlu1 %1365, %v882_v33   ;;  %v893_v40 = vmul.f32 %v1503_v39, %v1497_v8  ;;  %v892_v41 = vmul.f32 %v1503_v39, %v1493_v6 }
 0x3b9   :  { %906 = vperm.xlu1 %1365, %v881_v38  }
 0x3bd   :  { %935 = vperm.xlu1 %1365, %v893_v40  }
 0x3c1   :  { %930 = vperm.xlu1 %1365, %v892_v41  }
 0x428   :  { %v897_v46 = vpop.permute.xlu1 %896  ;;  %v902_v50 = vpop.permute.xlu0 %901 }
 0x429   :  { %v915_v54 = vmul.f32 %v902_v50, %v812_v51  ;;  %v914_v62 = vmul.f32 %v897_v46, %v808_v57 }
 0x42c   :  { %v926_v53 = vpop.permute.xlu1 %925 }
 0x42d   :  { %v939_v56 = vmul.f32 %v926_v53, %v814_v52 }
 0x42f   :  { %v952_v59 = vcombine.low %v915_v54, %v939_v56  ;;  %v953_v60 = vcombine.high %v915_v54, %v939_v56 }
 0x430   :  { %v921_v61 = vpop.permute.xlu1 %920 }
 0x431   :  { %v986_v35 = vrot.slane %v952_v59, %v971_v55  ;;  %v993_v63 = vrot.slane %v953_v60, %v971_v55  ;;  %v938_v1 = vmul.f32 %v921_v61, %v810_v58 }
 0x433   :  { %v950_v2 = vcombine.low %v914_v62, %v938_v1  ;;  %v951_v17 = vcombine.high %v914_v62, %v938_v1  ;;  %v1023_v3 = vpack.c.bf16 %v993_v63, %v986_v35 }
 0x434   :  { %v912_v19 = vpop.permute.xlu1 %911 }
 0x435   :  { %v972_v4 = vrot.slane %v950_v2, %v971_v55  ;;  %v979_v5 = vrot.slane %v951_v17, %v971_v55  ;;  %1193 = vmatprep.mubr.bf16.mxu1 %v1023_v3  ;;  %v917_v8 = vmul.f32 %v912_v19, %v822_v13 }
 0x437   :  { %v1022_v30 = vpack.c.bf16 %v979_v5, %v972_v4 }
 0x438   :  { %v907_v6 = vpop.permute.xlu1 %906 }
 0x439   :  { %1194 = vmatmul.mubr.bf16.vlgmr.msra.gmra.mrb[16].mxu1 %v1022_v30  ;;  %v916_v18 = vmul.f32 %v907_v6, %v818_v10 }
 0x43c   :  { %v936_v7 = vpop.permute.xlu1 %935 }
 0x43d   :  { %v941_v9 = vmul.f32 %v936_v7, %v824_v15 }
 0x43f   :  { %v956_v12 = vcombine.low %v917_v8, %v941_v9  ;;  %v957_v14 = vcombine.high %v917_v8, %v941_v9 }
 0x440   :  { %v931_v16 = vpop.permute.xlu1 %930 }
 0x441   :  { %v1014_v20 = vrot.slane %v956_v12, %v971_v55  ;;  %v1021_v22 = vrot.slane %v957_v14, %v971_v55  ;;  %v940_v0 = vmul.f32 %v931_v16, %v820_v11 }
 0x443   :  { %v954_v27 = vcombine.low %v916_v18, %v940_v0  ;;  %v955_v29 = vcombine.high %v916_v18, %v940_v0  ;;  %v1025_v32 = vpack.c.bf16 %v1021_v22, %v1014_v20 }
 0x445   :  { %v1000_v25 = vrot.slane %v954_v27, %v971_v55  ;;  %v1007_v33 = vrot.slane %v955_v29, %v971_v55  ;;  %1201 = vmatprep.mubr.bf16.mxu1 %v1025_v32 }
 0x447   :  { %v1024_v28 = vpack.c.bf16 %v1007_v33, %v1000_v25 }
 0x449   :  { %1202 = vmatmul.mubr.bf16.gmra.mrb[20].mxu1 %v1024_v28 }
 0x50c   :  { %v1339_v36 = vpop.f32.mrb[16].mxu1 }
 0x50d   :  { %v1340_v24 = vpop.f32.mrb[17].mxu1 }
 0x50e   :  { %v1341_v37 = vadd.f32 %v1340_v24, %v1339_v36  ;;  %v1342_v38 = vpop.f32.mrb[18].mxu1 }
 0x50f   :  { %v1343_v39 = vpop.f32.mrb[19].mxu1 }
 0x510   :  { %v1196_v40 = vadd.f32 %v1341_v37, %v1306_v21  ;;  %v1344_v41 = vadd.f32 %v1343_v39, %v1342_v38 }
 0x512   :  { %v1210_v42 = vadd.f32 %v1196_v40, %v1763_v23  ;;  %v1199_v43 = vadd.f32 %v1344_v41, %v1306_v21 }
 0x514   :  { %1214 = vst [vmem:[#allocation10] sm:$0xff] %v1210_v42  ;;  %v1211_v44 = vadd.f32 %v1199_v43, %v1765_v26 }
 0x516   :  { %1215 = vst [vmem:[#allocation10 + $0x8] sm:$0xff] %v1211_v44 }
 0x51c   :  { %v1345_v45 = vpop.f32.mrb[20].mxu1 }
 0x51d   :  { %v1346_v46 = vpop.f32.mrb[21].mxu1 }
 0x51e   :  { %v1347_v47 = vadd.f32 %v1346_v46, %v1345_v45  ;;  %v1348_v48 = vpop.f32.mrb[22].mxu1 }
 0x51f   :  { %v1349_v49 = vpop.f32.mrb[23].mxu1 }
 0x520   :  { %v1204_v50 = vadd.f32 %v1347_v47, %v1306_v21  ;;  %v1350_v51 = vadd.f32 %v1349_v49, %v1348_v48 }
 0x522   :  { %v1212_v52 = vadd.f32 %v1204_v50, %v1773_v31  ;;  %v1207_v53 = vadd.f32 %v1350_v51, %v1306_v21 }
 0x524   :  { %1216 = vst [vmem:[#allocation10 + $0x10] sm:$0xff] %v1212_v52  ;;  %v1213_v23 = vadd.f32 %v1207_v53, %v1775_v34 }
 0x526   :  { %1217 = vst [vmem:[#allocation10 + $0x18] sm:$0xff] %v1213_v23 }
 0x527   :  { %1603 = shalt.err (!%p1600_p8)
}
 0x528   :  { %s1604_s29 = scalar_lea.hbm %s1872_s9, 512 }
 0x529   :  { %p1605_p9 = scmp.ne.s32.totalorder %s1872_s9, %s1604_s29  ;;  %p1608_p10 = scmp.lt.u32.totalorder %s1604_s29, %s1872_s9 }
 0x52b   :  { %p1610_p11 = pnand %p1608_p10, %p1605_p9 }
 0x52d   :  { %1613 = shalt.err (!%p1610_p11)
}
 0x52e   :  { %1229 = dma.vmem_to_hbm [thread:$0]  %s1224_s27, 512, %s1872_s9, [#allocation4], %s1626_s1, %s1626_s1, %s1627_s10  }
 0x52f   :  { %1620 = dma.done.wait [#allocation4], 512  }
 0x530   :  { %1621 = vsyncadd [#allocation4], 4294966784 }
 0x531   :  { %1233 = vsyncpa [#allocation3], 1 }
 0x532   :  { %1234 = vsyncpa [#allocation6], 1 }
 0x533   :  { %1235 = vsyncpa [#allocation9], 1 }
 0x534   :  { %1236 = vsyncpa [#allocation4], 1 }

</bundles_post_ra>
